<compile_context>
chip_gen: v5e
topology: v5e:2x2
jax: 0.10.0
libtpu: 0.0.40
codegen_flags: <defaults>
</compile_context>

<pallas_src>
import functools
import math

import jax
import jax.numpy as jnp
from jax.experimental import pallas as pl
from jax.experimental.pallas import tpu as pltpu

LN_EPS = 1e-5
VMEM_LIMIT = 32 * 1024 * 1024  # raises v5e's 16 MiB default; safe on v6e/v7x


def _tile(dim, candidates):
    """Largest aligned tile that evenly divides `dim`, else the full dim."""
    for c in candidates:
        if dim >= c and dim % c == 0:
            return c
    return dim


# --------------------------- fused LN + linear (no bias) ---------------------

def _ln_linear_kernel(x_ref, g_ref, b_ref, w_ref, o_ref):
    x = x_ref[...].astype(jnp.float32)
    mean = jnp.mean(x, axis=-1, keepdims=True)
    var = jnp.mean(jnp.square(x - mean), axis=-1, keepdims=True)
    xn = (x - mean) * jax.lax.rsqrt(var + LN_EPS)
    xn = xn * g_ref[...].astype(jnp.float32) + b_ref[...].astype(jnp.float32)
    acc = jnp.dot(xn.astype(x_ref.dtype), w_ref[...],
                  preferred_element_type=jnp.float32)
    o_ref[...] = acc.astype(o_ref.dtype)


def ln_linear(x2d, gamma, beta, w):
    M, D = x2d.shape
    N = w.shape[1]
    tm = _tile(M, (512, 256, 128))
    tn = _tile(N, (512, 256, 128))
    return pl.pallas_call(
        _ln_linear_kernel,
        out_shape=jax.ShapeDtypeStruct((M, N), x2d.dtype),
        grid=(M // tm, N // tn),
        in_specs=[pl.BlockSpec((tm, D), lambda i, j: (i, 0)),
                  pl.BlockSpec((1, D), lambda i, j: (0, 0)),
                  pl.BlockSpec((1, D), lambda i, j: (0, 0)),
                  pl.BlockSpec((D, tn), lambda i, j: (0, j))],
        out_specs=pl.BlockSpec((tm, tn), lambda i, j: (i, j)),
        compiler_params=pltpu.CompilerParams(
            dimension_semantics=("parallel", "parallel"),
            vmem_limit_bytes=VMEM_LIMIT),
    )(x2d, gamma.reshape(1, D), beta.reshape(1, D), w)


# ---------------------- tiled matmul, no bias (K reduction) ------------------

def _matmul_kernel(x_ref, w_ref, o_ref, acc_ref):
    @pl.when(pl.program_id(2) == 0)
    def _():
        acc_ref[...] = jnp.zeros_like(acc_ref)
    acc_ref[...] += jnp.dot(x_ref[...], w_ref[...],
                            preferred_element_type=jnp.float32)

    @pl.when(pl.program_id(2) == pl.num_programs(2) - 1)
    def _():
        o_ref[...] = acc_ref[...].astype(o_ref.dtype)


def matmul(x2d, w):
    M, K = x2d.shape
    N = w.shape[1]
    tm = _tile(M, (512, 256, 128))
    tn = _tile(N, (512, 256, 128))
    tk = _tile(K, (1024, 512, 256))
    return pl.pallas_call(
        _matmul_kernel,
        out_shape=jax.ShapeDtypeStruct((M, N), x2d.dtype),
        grid=(M // tm, N // tn, K // tk),
        in_specs=[pl.BlockSpec((tm, tk), lambda i, j, k: (i, k)),
                  pl.BlockSpec((tk, tn), lambda i, j, k: (k, j))],
        out_specs=pl.BlockSpec((tm, tn), lambda i, j, k: (i, j)),
        scratch_shapes=[pltpu.VMEM((tm, tn), jnp.float32)],
        compiler_params=pltpu.CompilerParams(
            dimension_semantics=("parallel", "parallel", "arbitrary"),
            vmem_limit_bytes=VMEM_LIMIT),
    )(x2d, w)


# ------------- tiled matmul + bias + fused residual (K reduction) ------------

def _matmul_bias_res_kernel(x_ref, w_ref, b_ref, r_ref, o_ref, acc_ref):
    @pl.when(pl.program_id(2) == 0)
    def _():
        acc_ref[...] = jnp.zeros_like(acc_ref)
    acc_ref[...] += jnp.dot(x_ref[...], w_ref[...],
                            preferred_element_type=jnp.float32)

    @pl.when(pl.program_id(2) == pl.num_programs(2) - 1)
    def _():
        out = (acc_ref[...] + b_ref[...].astype(jnp.float32)
               + r_ref[...].astype(jnp.float32))
        o_ref[...] = out.astype(o_ref.dtype)


def matmul_bias_res(x2d, w, b, residual):
    M, K = x2d.shape
    N = w.shape[1]
    tm = _tile(M, (512, 256, 128))
    tn = _tile(N, (512, 256, 128))
    tk = _tile(K, (1024, 512, 256))
    return pl.pallas_call(
        _matmul_bias_res_kernel,
        out_shape=jax.ShapeDtypeStruct((M, N), x2d.dtype),
        grid=(M // tm, N // tn, K // tk),
        in_specs=[pl.BlockSpec((tm, tk), lambda i, j, k: (i, k)),
                  pl.BlockSpec((tk, tn), lambda i, j, k: (k, j)),
                  pl.BlockSpec((1, tn), lambda i, j, k: (0, j)),
                  pl.BlockSpec((tm, tn), lambda i, j, k: (i, j))],
        out_specs=pl.BlockSpec((tm, tn), lambda i, j, k: (i, j)),
        scratch_shapes=[pltpu.VMEM((tm, tn), jnp.float32)],
        compiler_params=pltpu.CompilerParams(
            dimension_semantics=("parallel", "parallel", "arbitrary"),
            vmem_limit_bytes=VMEM_LIMIT),
    )(x2d, w, b.reshape(1, N), residual)


# --------------------- fused LN + GEGLU projection (ff_w1) -------------------

def _ln_geglu_kernel(x_ref, g_ref, b_ref, wa_ref, ba_ref, wb_ref, bb_ref, o_ref):
    x = x_ref[...].astype(jnp.float32)
    mean = jnp.mean(x, axis=-1, keepdims=True)
    var = jnp.mean(jnp.square(x - mean), axis=-1, keepdims=True)
    xn = (x - mean) * jax.lax.rsqrt(var + LN_EPS)
    xn = (xn * g_ref[...].astype(jnp.float32)
          + b_ref[...].astype(jnp.float32)).astype(x_ref.dtype)
    h = jnp.dot(xn, wa_ref[...], preferred_element_type=jnp.float32) \
        + ba_ref[...].astype(jnp.float32)
    gate = jnp.dot(xn, wb_ref[...], preferred_element_type=jnp.float32) \
        + bb_ref[...].astype(jnp.float32)
    o_ref[...] = (h * jax.nn.gelu(gate, approximate=False)).astype(o_ref.dtype)


def ln_geglu(x2d, gamma, beta, wa, ba, wb, bb):
    M, D = x2d.shape
    F = wa.shape[1]
    tm = _tile(M, (256, 128))          # two weight slabs live in VMEM -> smaller rows
    tf = _tile(F, (512, 256, 128))
    return pl.pallas_call(
        _ln_geglu_kernel,
        out_shape=jax.ShapeDtypeStruct((M, F), x2d.dtype),
        grid=(M // tm, F // tf),
        in_specs=[pl.BlockSpec((tm, D), lambda i, j: (i, 0)),
                  pl.BlockSpec((1, D), lambda i, j: (0, 0)),
                  pl.BlockSpec((1, D), lambda i, j: (0, 0)),
                  pl.BlockSpec((D, tf), lambda i, j: (0, j)),
                  pl.BlockSpec((1, tf), lambda i, j: (0, j)),
                  pl.BlockSpec((D, tf), lambda i, j: (0, j)),
                  pl.BlockSpec((1, tf), lambda i, j: (0, j))],
        out_specs=pl.BlockSpec((tm, tf), lambda i, j: (i, j)),
        compiler_params=pltpu.CompilerParams(
            dimension_semantics=("parallel", "parallel"),
            vmem_limit_bytes=VMEM_LIMIT),
    )(x2d, gamma.reshape(1, D), beta.reshape(1, D),
      wa, ba.reshape(1, F), wb, bb.reshape(1, F))


# ------------------------ flash-style attention kernel -----------------------

def _flash_attn_kernel(q_ref, k_ref, v_ref, o_ref, m_sc, l_sc, acc_sc, *, scale):
    kv = pl.program_id(2)

    @pl.when(kv == 0)
    def _():
        m_sc[...] = jnp.full_like(m_sc, -jnp.inf)
        l_sc[...] = jnp.zeros_like(l_sc)
        acc_sc[...] = jnp.zeros_like(acc_sc)

    q = q_ref[0] * scale                      # fold scale into Q (tq x d)
    k = k_ref[0]                              # (tk, d)
    v = v_ref[0]                              # (tk, d)
    # contract last dims directly; no explicit k.T
    s = jax.lax.dot_general(q, k, (((1,), (1,)), ((), ())),
                            preferred_element_type=jnp.float32)   # (tq, tk)

    m_prev = m_sc[...]
    m_new = jnp.maximum(m_prev, jnp.max(s, axis=-1, keepdims=True))
    alpha = jnp.exp(m_prev - m_new)
    p = jnp.exp(s - m_new)
    l_sc[...] = alpha * l_sc[...] + jnp.sum(p, axis=-1, keepdims=True)
    acc_sc[...] = alpha * acc_sc[...] + jnp.dot(
        p.astype(v.dtype), v, preferred_element_type=jnp.float32)
    m_sc[...] = m_new

    @pl.when(kv == pl.num_programs(2) - 1)
    def _():
        inv_l = pl.reciprocal(l_sc[...], approx=True)
        o_ref[0] = (acc_sc[...] * inv_l).astype(o_ref.dtype)


def flash_attention(q, k, v, scale):
    BH, Nq, d = q.shape
    _, Nk, _ = k.shape
    tq = _tile(Nq, (256, 128))
    tk = _tile(Nk, (512, 256, 128))
    kern = functools.partial(_flash_attn_kernel, scale=scale)
    return pl.pallas_call(
        kern,
        out_shape=jax.ShapeDtypeStruct((BH, Nq, d), q.dtype),
        grid=(BH, Nq // tq, Nk // tk),
        in_specs=[pl.BlockSpec((1, tq, d), lambda b, i, j: (b, i, 0)),
                  pl.BlockSpec((1, tk, d), lambda b, i, j: (b, j, 0)),
                  pl.BlockSpec((1, tk, d), lambda b, i, j: (b, j, 0))],
        out_specs=pl.BlockSpec((1, tq, d), lambda b, i, j: (b, i, 0)),
        scratch_shapes=[pltpu.VMEM((tq, 1), jnp.float32),
                        pltpu.VMEM((tq, 1), jnp.float32),
                        pltpu.VMEM((tq, d), jnp.float32)],
        compiler_params=pltpu.CompilerParams(
            dimension_semantics=("parallel", "parallel", "arbitrary"),
            vmem_limit_bytes=VMEM_LIMIT),
    )(q, k, v)


# ------------------------------- module glue ---------------------------------

def cross_attention(x2d, ln_g, ln_b, ctx2d, p, heads, B, N, S):
    """LN is fused into the Q (and self-attn K/V) projections; the residual
    add is fused into the output projection."""
    inner = p["wq"].shape[1]
    d = inner // heads

    q = ln_linear(x2d, ln_g, ln_b, p["wq"])
    if ctx2d is None:                         # self-attention: K/V from LN(x)
        k = ln_linear(x2d, ln_g, ln_b, p["wk"])
        v = ln_linear(x2d, ln_g, ln_b, p["wv"])
        S_ = N
    else:                                     # cross-attention: K/V from context
        k = matmul(ctx2d, p["wk"])
        v = matmul(ctx2d, p["wv"])
        S_ = S

    # 'b n (h d) -> (b h) n d' (plain-JAX glue)
    q = q.reshape(B, N, heads, d).transpose(0, 2, 1, 3).reshape(B * heads, N, d)
    k = k.reshape(B, S_, heads, d).transpose(0, 2, 1, 3).reshape(B * heads, S_, d)
    v = v.reshape(B, S_, heads, d).transpose(0, 2, 1, 3).reshape(B * heads, S_, d)

    out = flash_attention(q, k, v, d ** (-0.5))
    # '(b h) n d -> b n (h d)'
    out = out.reshape(B, heads, N, d).transpose(0, 2, 1, 3).reshape(B * N, inner)
    # to_out linear + bias + residual fused; dropout(p=0) is identity
    return matmul_bias_res(out, p["wo"], p["bo"], x2d)


def basic_transformer_block(x, context, params, heads):
    B, N, D = x.shape
    _, S, _ = context.shape
    x2 = x.reshape(B * N, D)
    c2 = context.reshape(B * S, context.shape[-1])

    # attn1 (self-attention) + residual  (residual fused into out-projection)
    x2 = cross_attention(x2, params["ln1_g"], params["ln1_b"], None,
                         params["attn1"], heads, B, N, N)
    # attn2 (cross-attention) + residual
    x2 = cross_attention(x2, params["ln2_g"], params["ln2_b"], c2,
                         params["attn2"], heads, B, N, S)
    # FeedForward: LN + GEGLU fused, then w2 + bias + residual fused
    gated = ln_geglu(x2, params["ln3_g"], params["ln3_b"],
                     params["ff_w1a"], params["ff_b1a"],
                     params["ff_w1b"], params["ff_b1b"])
    x2 = matmul_bias_res(gated, params["ff_w2"], params["ff_b2"], x2)
    return x2.reshape(B, N, D)


# ----------------------------- pure-JAX reference ----------------------------

def _ref_ln(x, g, b):
    mean = x.mean(-1, keepdims=True)
    var = jnp.square(x - mean).mean(-1, keepdims=True)
    return (x - mean) / jnp.sqrt(var + LN_EPS) * g + b


def _ref_attn(x, context, p, heads):
    B, N, D = x.shape
    _, S, C = context.shape
    inner = p["wq"].shape[1]
    d = inner // heads
    q = x @ p["wq"]
    k = context @ p["wk"]
    v = context @ p["wv"]
    q = q.reshape(B, N, heads, d).transpose(0, 2, 1, 3)
    k = k.reshape(B, S, heads, d).transpose(0, 2, 1, 3)
    v = v.reshape(B, S, heads, d).transpose(0, 2, 1, 3)
    sim = jnp.einsum("bhid,bhjd->bhij", q, k) * (d ** (-0.5))
    attn = jax.nn.softmax(sim, axis=-1)
    out = jnp.einsum("bhij,bhjd->bhid", attn, v)
    out = out.transpose(0, 2, 1, 3).reshape(B, N, inner)
    return out @ p["wo"] + p["bo"]


def _ref_block(x, context, params, heads):
    h = _ref_ln(x, params["ln1_g"], params["ln1_b"])
    x = _ref_attn(h, h, params["attn1"], heads) + x
    h = _ref_ln(x, params["ln2_g"], params["ln2_b"])
    x = _ref_attn(h, context, params["attn2"], heads) + x
    h = _ref_ln(x, params["ln3_g"], params["ln3_b"])
    a = h @ params["ff_w1a"] + params["ff_b1a"]
    g = h @ params["ff_w1b"] + params["ff_b1b"]
    ff = (a * jax.nn.gelu(g, approximate=False)) @ params["ff_w2"] + params["ff_b2"]
    return ff + x


# ----------------------------------- main -------------------------------------

def init_params(key, dim, n_heads, d_head, context_dim, ff_mult=4):
    inner = n_heads * d_head
    ff_inner = int(dim * ff_mult)
    ks = jax.random.split(key, 18)
    s = 0.05

    def rnd(k, shape):
        return (s * jax.random.normal(k, shape)).astype(jnp.float32)

    return {
        "ln1_g": jnp.ones((dim,), jnp.float32), "ln1_b": jnp.zeros((dim,), jnp.float32),
        "ln2_g": jnp.ones((dim,), jnp.float32), "ln2_b": jnp.zeros((dim,), jnp.float32),
        "ln3_g": jnp.ones((dim,), jnp.float32), "ln3_b": jnp.zeros((dim,), jnp.float32),
        "attn1": {
            "wq": rnd(ks[0], (dim, inner)),
            "wk": rnd(ks[1], (dim, inner)),
            "wv": rnd(ks[2], (dim, inner)),
            "wo": rnd(ks[3], (inner, dim)),
            "bo": rnd(ks[4], (dim,)),
        },
        "attn2": {
            "wq": rnd(ks[5], (dim, inner)),
            "wk": rnd(ks[6], (context_dim, inner)),
            "wv": rnd(ks[7], (context_dim, inner)),
            "wo": rnd(ks[8], (inner, dim)),
            "bo": rnd(ks[9], (dim,)),
        },
        # GEGLU projection stored pre-split (h-half / gate-half) so the kernel
        # never slices columns mid-kernel.
        "ff_w1a": rnd(ks[10], (dim, ff_inner)),
        "ff_b1a": rnd(ks[11], (ff_inner,)),
        "ff_w1b": rnd(ks[12], (dim, ff_inner)),
        "ff_b1b": rnd(ks[13], (ff_inner,)),
        "ff_w2": rnd(ks[14], (ff_inner, dim)),
        "ff_b2": rnd(ks[15], (dim,)),
    }


if __name__ == "__main__":
    B, N, D = 2, 16, 32          # batch, tokens, model dim
    n_heads, d_head = 4, 8       # inner_dim = 32
    S, C = 8, 24                 # context tokens / context dim

    key = jax.random.PRNGKey(0)
    kx, kc, kp = jax.random.split(key, 3)
    x = jax.random.normal(kx, (B, N, D), dtype=jnp.float32)
    context = jax.random.normal(kc, (B, S, C), dtype=jnp.float32)
    params = init_params(kp, D, n_heads, d_head, C)

    out = basic_transformer_block(x, context, params, n_heads)
    out = jax.block_until_ready(out)

    ref = _ref_block(x, context, params, n_heads)
    assert out.shape == (B, N, D)
    assert jnp.allclose(out, ref, atol=2e-3, rtol=2e-3), "mismatch vs reference"

    print("KERNEL_OK")
</pallas_src>

<mosaic_0001>
module attributes {stable_mosaic.version = 11 : i64} {
  func.func @_ln_linear_kernel(%arg0: i32, %arg1: i32, %arg2: memref<32x32xf32, #tpu.memory_space<vmem>>, %arg3: memref<1x32xf32, #tpu.memory_space<vmem>>, %arg4: memref<1x32xf32, #tpu.memory_space<vmem>>, %arg5: memref<32x32xf32, #tpu.memory_space<vmem>>, %arg6: memref<32x32xf32, #tpu.memory_space<vmem>>) attributes {dimension_semantics = [#tpu.dimension_semantics<parallel>, #tpu.dimension_semantics<parallel>], iteration_bounds = array<i64: 1, 1>, scalar_prefetch = 0 : i64, scratch_operands = 0 : i64, tpu.core_type = #tpu.core_type<tc>, window_params = [{transform_indices = @transform_0, window_bounds = array<i64: 32, 32>}, {pipeline_mode = #tpu.pipeline_mode<synchronous>, transform_indices = @transform_1, window_bounds = array<i64: 1, 32>}, {pipeline_mode = #tpu.pipeline_mode<synchronous>, transform_indices = @transform_2, window_bounds = array<i64: 1, 32>}, {transform_indices = @transform_3, window_bounds = array<i64: 32, 32>}, {transform_indices = @transform_4, window_bounds = array<i64: 32, 32>}]} {
    %c0 = arith.constant 0 : index
    %c0_0 = arith.constant 0 : index
    %0 = vector.load %arg2[%c0, %c0_0] : memref<32x32xf32, #tpu.memory_space<vmem>>, vector<32x32xf32>
    %cst = arith.constant dense<0.000000e+00> : vector<32xf32>
    %1 = vector.multi_reduction <add>, %0, %cst [1] : vector<32x32xf32> to vector<32xf32>
    %2 = vector.shape_cast %1 : vector<32xf32> to vector<32x1xf32>
    %cst_1 = arith.constant 3.200000e+01 : f32
    %3 = vector.broadcast %cst_1 : f32 to vector<32x1xf32>
    %4 = arith.divf %2, %3 : vector<32x1xf32>
    %5 = vector.broadcast %4 : vector<32x1xf32> to vector<32x32xf32>
    %6 = arith.subf %0, %5 : vector<32x32xf32>
    %7 = arith.mulf %6, %6 : vector<32x32xf32>
    %cst_2 = arith.constant dense<0.000000e+00> : vector<32xf32>
    %8 = vector.multi_reduction <add>, %7, %cst_2 [1] : vector<32x32xf32> to vector<32xf32>
    %9 = vector.shape_cast %8 : vector<32xf32> to vector<32x1xf32>
    %cst_3 = arith.constant 3.200000e+01 : f32
    %10 = vector.broadcast %cst_3 : f32 to vector<32x1xf32>
    %11 = arith.divf %9, %10 : vector<32x1xf32>
    %12 = vector.broadcast %4 : vector<32x1xf32> to vector<32x32xf32>
    %13 = arith.subf %0, %12 : vector<32x32xf32>
    %cst_4 = arith.constant 9.99999974E-6 : f32
    %14 = vector.broadcast %cst_4 : f32 to vector<32x1xf32>
    %15 = arith.addf %11, %14 : vector<32x1xf32>
    %16 = math.rsqrt %15 : vector<32x1xf32>
    %17 = vector.broadcast %16 : vector<32x1xf32> to vector<32x32xf32>
    %18 = arith.mulf %13, %17 : vector<32x32xf32>
    %c0_5 = arith.constant 0 : index
    %c0_6 = arith.constant 0 : index
    %19 = vector.load %arg3[%c0_5, %c0_6] : memref<1x32xf32, #tpu.memory_space<vmem>>, vector<1x32xf32>
    %20 = vector.broadcast %19 : vector<1x32xf32> to vector<32x32xf32>
    %21 = arith.mulf %18, %20 : vector<32x32xf32>
    %c0_7 = arith.constant 0 : index
    %c0_8 = arith.constant 0 : index
    %22 = vector.load %arg4[%c0_7, %c0_8] : memref<1x32xf32, #tpu.memory_space<vmem>>, vector<1x32xf32>
    %23 = vector.broadcast %22 : vector<1x32xf32> to vector<32x32xf32>
    %24 = arith.addf %21, %23 : vector<32x32xf32>
    %c0_9 = arith.constant 0 : index
    %c0_10 = arith.constant 0 : index
    %25 = vector.load %arg5[%c0_9, %c0_10] : memref<32x32xf32, #tpu.memory_space<vmem>>, vector<32x32xf32>
    %cst_11 = arith.constant dense<0.000000e+00> : vector<32x32xf32>
    %26 = tpu.matmul %24, %25, %cst_11 {dimension_numbers = #tpu.dot_dimension_numbers<[1], [0], [0], [1], [0, 0, 1, 1], [], []>} : vector<32x32xf32>, vector<32x32xf32>, vector<32x32xf32> -> vector<32x32xf32>
    %c0_12 = arith.constant 0 : index
    %c0_13 = arith.constant 0 : index
    %27 = vector.load %arg6[%c0_12, %c0_13] : memref<32x32xf32, #tpu.memory_space<vmem>>, vector<32x32xf32>
    tpu.vector_store %arg6[%c0_12, %c0_13], %26 {strides = array<i32>} : memref<32x32xf32, #tpu.memory_space<vmem>>, vector<32x32xf32>,
    return
  }
  func.func @transform_0(%arg0: i32, %arg1: i32) -> (i32, i32) {
    %c0_i32 = arith.constant 0 : i32
    %c0_i32_0 = arith.constant 0 : i32
    return %arg0, %c0_i32 : i32, i32
  }
  func.func @transform_1(%arg0: i32, %arg1: i32) -> (i32, i32) {
    %c0_i32 = arith.constant 0 : i32
    %c0_i32_0 = arith.constant 0 : i32
    %c0_i32_1 = arith.constant 0 : i32
    return %c0_i32, %c0_i32_0 : i32, i32
  }
  func.func @transform_2(%arg0: i32, %arg1: i32) -> (i32, i32) {
    %c0_i32 = arith.constant 0 : i32
    %c0_i32_0 = arith.constant 0 : i32
    %c0_i32_1 = arith.constant 0 : i32
    return %c0_i32, %c0_i32_0 : i32, i32
  }
  func.func @transform_3(%arg0: i32, %arg1: i32) -> (i32, i32) {
    %c0_i32 = arith.constant 0 : i32
    %c0_i32_0 = arith.constant 0 : i32
    return %c0_i32, %arg1 : i32, i32
  }
  func.func @transform_4(%arg0: i32, %arg1: i32) -> (i32, i32) {
    %c0_i32 = arith.constant 0 : i32
    return %arg0, %arg1 : i32, i32
  }
}

</mosaic_0001>

<bundles_post_ra>
// kernel: tpu_custom_call.1
= control target key start
LH: loop header
LB: loop body
LE: loop exit
PB: predicated region body
PF: predicated region fallthrough
CT: control target
= control target key end

     0   :  { %9 = vsyncpa [#allocation3], 0  ;;  %s477_s0 = inlined_call_operand.hbm [shape: f32[32,32], index: 0, kind: input, shape index: {}]   ;;  %s478_s1 = inlined_call_operand.hbm [shape: f32[1,32], index: 1, kind: input, shape index: {}]   ;;  %s479_s2 = inlined_call_operand.vmem [shape: f32[1,32], index: 2, kind: input, shape index: {}]   ;;  %s480_s3 = inlined_call_operand.hbm [shape: f32[32,32], index: 3, kind: input, shape index: {}]   ;;  %s481_s4 = inlined_call_operand.hbm [shape: f32[32,32], index: 4, kind: output, shape index: {}]  }
   0x1   :  { %10 = vsyncpa [#allocation6], 0  ;;  %s30_s17 = sshll.u32 %s478_s1, 4  ;;  %s31_s17 = int_to_ptr.hbm [resolvable:$true] %s30_s17 }
   0x2   :  { %11 = vsyncpa [#allocation4], 0  ;;  %s385_s18 = smov [#allocation5]   ;;  %s16_s22 = sshll.u32 %s477_s0, 4  ;;  %s17_s22 = int_to_ptr.hbm [resolvable:$true] %s16_s22 }
   0x3   :  { %s32_s19 = sshll.u32 %s385_s18, 4  ;;  %s386_s23 = smov [#allocation2]   ;;  %s33_s19 = int_to_ptr.vmem [resolvable:$true] %s32_s19 }
   0x4   :  { %35 = dma.hbm_to_vmem [thread:$0]  %s31_s17, 16, %s33_s19, [#allocation6]  }
   0x5   :  { %s18_s24 = sshll.u32 %s386_s23, 4  ;;  %s387_s25 = smov 128   ;;  %s19_s24 = int_to_ptr.vmem [resolvable:$true] %s18_s24 }
   0x6   :  { %s388_s26 = smov 8   ;;  %s42_s28 = sshll.u32 %s480_s3, 4  ;;  %s43_s28 = int_to_ptr.hbm [resolvable:$true] %s42_s28 }
   0x7   :  { %24 = dma.hbm_to_vmem [thread:$0]  %s17_s22, 512, %s19_s24, [#allocation3], %s387_s25, %s387_s25, %s388_s26  }
   0x8   :  { %s389_s29 = smov [#allocation7]  }
   0x9   :  { %s44_s30 = sshll.u32 %s389_s29, 4  ;;  %s45_s30 = int_to_ptr.vmem [resolvable:$true] %s44_s30 }
   0xa   :  { %50 = dma.hbm_to_vmem [thread:$0]  %s43_s28, 512, %s45_s30, [#allocation6], %s387_s25, %s387_s25, %s388_s26  }
   0xb   :  { %379 = dma.done.wait [#allocation3], 512  }
   0xc   :  { %380 = vsyncadd [#allocation3], 4294966784 }
   0xd   :  { %381 = dma.done.wait [#allocation6], 528  }
   0xe   :  { %382 = vsyncadd [#allocation6], 4294966768  ;;  %vm67_vm0 = vcmask 261120   ;;  %v65_v0 = vld [vmem:[#allocation2 + $0x10] sm:$0xff]  ;;  %v63_v1 = vld [vmem:[#allocation2] sm:$0xff]  ;;  %v390_v8 = vmov 32.0  }
   0xf   :  { %v74_v2 = vsel %vm67_vm0, %v65_v0, 0.0  ;;  %v68_v3 = vsel %vm67_vm0, %v63_v1, 0.0  ;;  %v66_v4 = vld [vmem:[#allocation2 + $0x18] sm:$0xff]  ;;  %v64_v5 = vld [vmem:[#allocation2 + $0x8] sm:$0xff]  ;;  %273 = vrcp.f32 %v390_v8  ;;  %v272_v8 = vld [vmem:[%s479_s2] ss:$0 sm:$0xff] }
  0x10   :  { %75 = vadd.xlane.f32.xlu0 %v74_v2  ;;  %69 = vadd.xlane.f32.xlu1 %v68_v3  ;;  %v77_v6 = vsel %vm67_vm0, %v66_v4, 0.0  ;;  %v71_v7 = vsel %vm67_vm0, %v64_v5, 0.0  ;;  %v182_v35 = vld [vmem:[#allocation7 + $0x18] sm:$0xff]  ;;  %v181_v36 = vld [vmem:[#allocation7 + $0x10] sm:$0xff]  ;;  %v180_v37 = vld [vmem:[#allocation7 + $0x8] sm:$0xff]  ;;  %s391_s2 = smov [#allocation8]  }
  0x11   :  { %207 = vmatpush.msra.mxu0 %v182_v35  ;;  %253 = vmatpush.msra.mxu2 %v182_v35  ;;  %v179_v38 = vld [vmem:[#allocation7] sm:$0xff]  ;;  %v271_v3 = vld [vmem:[#allocation5] ss:$0 sm:$0xff]  ;;  %s232_s5 = sshll.u32 %s391_s2, 4  ;;  %s234_s8 = sshll.u32 %s481_s4, 4  ;;  %s233_s5 = int_to_ptr.vmem [resolvable:$true] %s232_s5  ;;  %s235_s8 = int_to_ptr.hbm [resolvable:$true] %s234_s8 }
  0x12   :  { %252 = vmatpush.msra.mxu1 %v182_v35  ;;  %254 = vmatpush.msra.mxu3 %v182_v35 }
  0x13   :  { %208 = vmatpush.msra.mxu0 %v181_v36  ;;  %256 = vmatpush.msra.mxu2 %v181_v36 }
  0x14   :  { %255 = vmatpush.msra.mxu1 %v181_v36  ;;  %257 = vmatpush.msra.mxu3 %v181_v36 }
  0x15   :  { %v274_v9 = vpop.eup %273  ;;  %209 = vmatpush.msra.mxu0 %v180_v37  ;;  %259 = vmatpush.msra.mxu2 %v180_v37 }
  0x16   :  { %v81_v10 = vmul.f32 32.0, %v274_v9  ;;  %vm85_vm1 = vweird.f32 %v274_v9  ;;  %258 = vmatpush.msra.mxu1 %v180_v37  ;;  %260 = vmatpush.msra.mxu3 %v180_v37 }
  0x17   :  { %210 = vmatpush.msra.mxu0 %v179_v38  ;;  %262 = vmatpush.msra.mxu2 %v179_v38 }
  0x18   :  { %78 = vadd.xlane.f32.xlu0 %v77_v6  ;;  %72 = vadd.xlane.f32.xlu1 %v71_v7  ;;  %v82_v11 = vsub.f32 1.0, %v81_v10 }
  0x19   :  { %261 = vmatpush.msra.mxu1 %v179_v38  ;;  %263 = vmatpush.msra.mxu3 %v179_v38 }
  0x1a   :  { %v83_v12 = vmul.f32 %v274_v9, %v82_v11 }
  0x1c   :  { %v84_v13 = vadd.f32 %v274_v9, %v83_v12 }
  0x1e   :  { %v86_v14 = vsel %vm85_vm1, %v274_v9, %v84_v13 }
  0x83   :  { %v76_v15 = vpop.xlane.xlu0 %75  ;;  %v70_v16 = vpop.xlane.xlu1 %69 }
  0x84   :  { %v89_v17 = vmul.f32 %v86_v14, %v76_v15  ;;  %v87_v18 = vmul.f32 %v86_v14, %v70_v16 }
  0x86   :  { %v436_v19 = vsub.f32 %v65_v0, %v89_v17  ;;  %v438_v20 = vsub.f32 %v63_v1, %v87_v18 }
  0x88   :  { %v97_v21 = vmul.f32 %v436_v19, %v436_v19  ;;  %v95_v22 = vmul.f32 %v438_v20, %v438_v20 }
  0x8a   :  { %v105_v23 = vsel %vm67_vm0, %v97_v21, 0.0  ;;  %v99_v24 = vsel %vm67_vm0, %v95_v22, 0.0 }
  0x8b   :  { %106 = vadd.xlane.f32.xlu2 %v105_v23  ;;  %v79_v25 = vpop.xlane.xlu0 %78  ;;  %100 = vadd.xlane.f32.xlu0 %v99_v24  ;;  %v73_v26 = vpop.xlane.xlu1 %72 }
  0x8c   :  { %v90_v27 = vmul.f32 %v86_v14, %v79_v25  ;;  %v88_v28 = vmul.f32 %v86_v14, %v73_v26 }
  0x8e   :  { %v446_v29 = vsub.f32 %v66_v4, %v90_v27  ;;  %v448_v30 = vsub.f32 %v64_v5, %v88_v28 }
  0x90   :  { %v98_v31 = vmul.f32 %v446_v29, %v446_v29  ;;  %v96_v32 = vmul.f32 %v448_v30, %v448_v30 }
  0x92   :  { %v108_v33 = vsel %vm67_vm0, %v98_v31, 0.0  ;;  %v102_v34 = vsel %vm67_vm0, %v96_v32, 0.0 }
  0x93   :  { %109 = vadd.xlane.f32.xlu2 %v108_v33  ;;  %103 = vadd.xlane.f32.xlu1 %v102_v34 }
  0xfe   :  { %v107_v39 = vpop.xlane.xlu2 %106  ;;  %v101_v40 = vpop.xlane.xlu0 %100 }
  0xff   :  { %v113_v41 = vmul.f32 %v107_v39, %v86_v14  ;;  %v111_v42 = vmul.f32 %v101_v40, %v86_v14 }
 0x101   :  { %v117_v43 = vadd.f32 1e-05, %v113_v41  ;;  %v115_v44 = vadd.f32 1e-05, %v111_v42 }
 0x103   :  { %275 = vrsqrt.f32 %v117_v43  ;;  %vm125_vm3 = vweird.f32 %v115_v44  ;;  %vm145_vm5 = vweird.f32 %v117_v43 }
 0x104   :  { %277 = vrsqrt.f32 %v115_v44 }
 0x106   :  { %v110_v45 = vpop.xlane.xlu2 %109  ;;  %v104_v46 = vpop.xlane.xlu1 %103 }
 0x107   :  { %v114_v47 = vmul.f32 %v110_v45, %v86_v14  ;;  %v112_v48 = vmul.f32 %v104_v46, %v86_v14 }
 0x109   :  { %v276_v49 = vpop.eup %275  ;;  %v118_v50 = vadd.f32 1e-05, %v114_v47  ;;  %v116_v51 = vadd.f32 1e-05, %v112_v48 }
 0x10a   :  { %v278_v52 = vpop.eup %277  ;;  %v140_v53 = vmul.f32 %v276_v49, %v117_v43  ;;  %vm146_vm2 = vweird.f32 %v276_v49 }
 0x10b   :  { %v120_v54 = vmul.f32 %v278_v52, %v115_v44  ;;  %279 = vrsqrt.f32 %v118_v50  ;;  %vm126_vm4 = vweird.f32 %v278_v52  ;;  %vm147_vm6 = vmor %vm145_vm5, %vm146_vm2  ;;  %vm135_vm9 = vweird.f32 %v116_v51 }
 0x10c   :  { %v141_v55 = vmul.f32 %v276_v49, %v140_v53  ;;  %281 = vrsqrt.f32 %v116_v51  ;;  %vm127_vm7 = vmor %vm125_vm3, %vm126_vm4  ;;  %vm155_vm11 = vweird.f32 %v118_v50 }
 0x10d   :  { %v121_v56 = vmul.f32 %v278_v52, %v120_v54 }
 0x10e   :  { %v142_v57 = vmul.f32 0.5, %v141_v55 }
 0x10f   :  { %v122_v58 = vmul.f32 0.5, %v121_v56 }
 0x110   :  { %v143_v59 = vsub.f32 1.5, %v142_v57 }
 0x111   :  { %v280_v60 = vpop.eup %279  ;;  %v123_v61 = vsub.f32 1.5, %v122_v58 }
 0x112   :  { %v282_v62 = vpop.eup %281  ;;  %v144_v63 = vmul.f32 %v276_v49, %v143_v59  ;;  %v150_v0 = vmul.f32 %v280_v60, %v118_v50  ;;  %vm156_vm8 = vweird.f32 %v280_v60 }
 0x113   :  { %v124_v1 = vmul.f32 %v278_v52, %v123_v61  ;;  %v130_v2 = vmul.f32 %v282_v62, %v116_v51  ;;  %vm136_vm10 = vweird.f32 %v282_v62  ;;  %vm157_vm12 = vmor %vm155_vm11, %vm156_vm8 }
 0x114   :  { %v148_v4 = vsel %vm147_vm6, %v276_v49, %v144_v63  ;;  %v151_v5 = vmul.f32 %v280_v60, %v150_v0  ;;  %vm137_vm13 = vmor %vm135_vm9, %vm136_vm10 }
 0x115   :  { %v128_v6 = vsel %vm127_vm7, %v278_v52, %v124_v1  ;;  %v131_v7 = vmul.f32 %v282_v62, %v130_v2  ;;  %v161_v9 = vmul.f32 %v148_v4, %v436_v19 }
 0x116   :  { %v152_v10 = vmul.f32 0.5, %v151_v5  ;;  %v159_v11 = vmul.f32 %v128_v6, %v438_v20 }
 0x117   :  { %v132_v12 = vmul.f32 0.5, %v131_v7  ;;  %v169_v13 = vmul.f32 %v271_v3, %v161_v9 }
 0x118   :  { %v153_v14 = vsub.f32 1.5, %v152_v10  ;;  %v167_v15 = vmul.f32 %v271_v3, %v159_v11 }
 0x119   :  { %v133_v16 = vsub.f32 1.5, %v132_v12  ;;  %v177_v17 = vadd.f32 %v272_v8, %v169_v13 }
 0x11a   :  { %v154_v18 = vmul.f32 %v280_v60, %v153_v14  ;;  %v175_v21 = vadd.f32 %v272_v8, %v167_v15 }
 0x11b   :  { %v134_v22 = vmul.f32 %v282_v62, %v133_v16  ;;  %250 = vmatmul.msk.f32.vlgmr.msra.gmra.mxu2 %vm67_vm0, %v177_v17 }
 0x11c   :  { %v158_v19 = vsel %vm157_vm12, %v280_v60, %v154_v18  ;;  %248 = vmatmul.msk.f32.vlgmr.msra.gmra.mxu0 %vm67_vm0, %v175_v21 }
 0x11d   :  { %v138_v20 = vsel %vm137_vm13, %v282_v62, %v134_v22  ;;  %v162_v23 = vmul.f32 %v158_v19, %v446_v29 }
 0x11e   :  { %v160_v24 = vmul.f32 %v138_v20, %v448_v30 }
 0x11f   :  { %v170_v25 = vmul.f32 %v271_v3, %v162_v23 }
 0x120   :  { %v168_v26 = vmul.f32 %v271_v3, %v160_v24 }
 0x121   :  { %v178_v27 = vadd.f32 %v272_v8, %v170_v25 }
 0x122   :  { %v176_v28 = vadd.f32 %v272_v8, %v168_v26 }
 0x123   :  { %251 = vmatmul.msk.f32.vlgmr.msra.gmra.mxu3 %vm67_vm0, %v178_v27 }
 0x124   :  { %249 = vmatmul.msk.f32.vlgmr.msra.gmra.mxu1 %vm67_vm0, %v176_v28 }
 0x199   :  { %v212_v31 = vpop.f32.mrf.mxu0 }
 0x19a   :  { %224 = vst.msk [vmem:[#allocation8] sm:$0xff] %vm67_vm0, %v212_v31 }
 0x19e   :  { %v218_v32 = vpop.f32.mrf.mxu2 }
 0x19f   :  { %226 = vst.msk [vmem:[#allocation8 + $0x10] sm:$0xff] %vm67_vm0, %v218_v32 }
 0x1a1   :  { %v215_v33 = vpop.f32.mrf.mxu1 }
 0x1a2   :  { %225 = vst.msk [vmem:[#allocation8 + $0x8] sm:$0xff] %vm67_vm0, %v215_v33 }
 0x1a6   :  { %v221_v29 = vpop.f32.mrf.mxu3 }
 0x1a7   :  { %227 = vst.msk [vmem:[#allocation8 + $0x18] sm:$0xff] %vm67_vm0, %v221_v29 }
 0x1a8   :  { %240 = dma.vmem_to_hbm [thread:$0]  %s233_s5, 512, %s235_s8, [#allocation4], %s387_s25, %s387_s25, %s388_s26  }
 0x1a9   :  { %383 = dma.done.wait [#allocation4], 512  }
 0x1aa   :  { %384 = vsyncadd [#allocation4], 4294966784 }
 0x1ab   :  { %245 = vsyncpa [#allocation3], 1 }
 0x1ac   :  { %246 = vsyncpa [#allocation6], 1 }
 0x1ad   :  { %247 = vsyncpa [#allocation4], 1 }

</bundles_post_ra>
